<compile_context>
chip_gen: v6e
topology: v6e:2x2x1
jax: 0.10.0
libtpu: 0.0.40
codegen_flags: <defaults>
</compile_context>

<pallas_src>
import jax
import jax.numpy as jnp
from jax import lax
from jax.experimental import pallas as pl
from jax.experimental.pallas import tpu as pltpu


def _projection_head_kernel(x_ref, w_ref, b_ref, o_ref):
    # x_ref: (TM, D_in), w_ref: (D_in, D_out), b_ref: (1, D_out), o_ref: (TM, D_out)
    # Linear on the MXU: native operand dtype, f32 accumulation.
    y = jnp.dot(x_ref[...], w_ref[...], preferred_element_type=jnp.float32)
    y = y + b_ref[...].astype(jnp.float32)
    # ReLU (VPU).
    y = jnp.maximum(y, 0.0)
    # F.normalize(dim=-1): y / clamp_min(||y||_2, 1e-12)  ==  y * rsqrt(max(sum(y^2), 1e-24))
    sumsq = jnp.sum(y * y, axis=-1, keepdims=True)
    inv_norm = lax.rsqrt(jnp.maximum(sumsq, 1e-24))  # EUP, own VLIW slot
    o_ref[...] = (y * inv_norm).astype(o_ref.dtype)


def _round_up(n, m):
    return ((n + m - 1) // m) * m


def projection_head(x, w_t, b, *, tm=512, out_dtype=None):
    """x: (B, D_in); w_t: (D_in, D_out) (pre-transposed nn.Linear weight); b: (D_out,)."""
    B, D_in = x.shape
    D_out = w_t.shape[1]
    out_dtype = x.dtype if out_dtype is None else out_dtype

    # Row tile: multiple of 8 sublanes, no larger than (8-aligned) batch.
    tm_eff = _round_up(min(tm, _round_up(B, 8)), 8)
    B_pad = _round_up(B, tm_eff)
    if B_pad != B:
        x = jnp.pad(x, ((0, B_pad - B), (0, 0)))

    b2 = b.reshape(1, D_out)

    out = pl.pallas_call(
        _projection_head_kernel,
        out_shape=jax.ShapeDtypeStruct((B_pad, D_out), out_dtype),
        grid_spec=pl.GridSpec(
            grid=(B_pad // tm_eff,),
            in_specs=[
                pl.BlockSpec((tm_eff, D_in), lambda i: (i, 0)),   # streamed x tile
                pl.BlockSpec((D_in, D_out), lambda i: (0, 0)),    # resident weight
                pl.BlockSpec((1, D_out), lambda i: (0, 0)),       # resident bias
            ],
            out_specs=pl.BlockSpec((tm_eff, D_out), lambda i: (i, 0)),
        ),
        compiler_params=pltpu.CompilerParams(
            dimension_semantics=("parallel",),
        ),
    )(x, w_t, b2)

    if B_pad != B:
        out = out[:B]
    return out


def _reference(x, w, b):
    # Same semantics as the PyTorch forward (f32 reference).
    y = jnp.maximum(x.astype(jnp.float32) @ w.T.astype(jnp.float32) + b.astype(jnp.float32), 0.0)
    n = jnp.maximum(jnp.linalg.norm(y, axis=-1, keepdims=True), 1e-12)
    return y / n


if __name__ == "__main__":
    input_dim, output_dim = 768, 128

    key = jax.random.PRNGKey(0)
    kx, kw, kb, kx2 = jax.random.split(key, 4)

    # Deterministic synthetic parameters (shapes match nn.Linear(768, 128)).
    w = jax.random.normal(kw, (output_dim, input_dim), dtype=jnp.float32) * 0.02
    b = jax.random.normal(kb, (output_dim,), dtype=jnp.float32) * 0.02
    w_t = w.T  # (D_in, D_out)

    # Small batch (exercises the tm clamp path).
    x_small = jax.random.normal(kx, (8, input_dim), dtype=jnp.float32)
    out_small = jax.block_until_ready(projection_head(x_small, w_t, b))
    ref_small = _reference(x_small, w, b)
    assert out_small.shape == (8, output_dim)
    assert jnp.allclose(out_small, ref_small, atol=1e-5, rtol=1e-5)

    # Non-tile-multiple batch (exercises padding + multi-step grid).
    x_big = jax.random.normal(kx2, (300, input_dim), dtype=jnp.float32)
    out_big = jax.block_until_ready(projection_head(x_big, w_t, b, tm=128))
    ref_big = _reference(x_big, w, b)
    assert out_big.shape == (300, output_dim)
    assert jnp.allclose(out_big, ref_big, atol=1e-5, rtol=1e-5)

    print("KERNEL_OK")
</pallas_src>

<mosaic_0001>
module attributes {stable_mosaic.version = 11 : i64} {
  func.func @_projection_head_kernel(%arg0: i32, %arg1: memref<8x768xf32, #tpu.memory_space<vmem>>, %arg2: memref<768x128xf32, #tpu.memory_space<vmem>>, %arg3: memref<1x128xf32, #tpu.memory_space<vmem>>, %arg4: memref<8x128xf32, #tpu.memory_space<vmem>>) attributes {dimension_semantics = [#tpu.dimension_semantics<parallel>], iteration_bounds = array<i64: 1>, scalar_prefetch = 0 : i64, scratch_operands = 0 : i64, tpu.core_type = #tpu.core_type<tc>, window_params = [{transform_indices = @transform_0, window_bounds = array<i64: 8, 768>}, {pipeline_mode = #tpu.pipeline_mode<synchronous>, transform_indices = @transform_1, window_bounds = array<i64: 768, 128>}, {pipeline_mode = #tpu.pipeline_mode<synchronous>, transform_indices = @transform_2, window_bounds = array<i64: 1, 128>}, {transform_indices = @transform_3, window_bounds = array<i64: 8, 128>}]} {
    %c0 = arith.constant 0 : index
    %c0_0 = arith.constant 0 : index
    %0 = vector.load %arg1[%c0, %c0_0] : memref<8x768xf32, #tpu.memory_space<vmem>>, vector<8x768xf32>
    %c0_1 = arith.constant 0 : index
    %c0_2 = arith.constant 0 : index
    %1 = vector.load %arg2[%c0_1, %c0_2] : memref<768x128xf32, #tpu.memory_space<vmem>>, vector<768x128xf32>
    %cst = arith.constant dense<0.000000e+00> : vector<8x128xf32>
    %2 = tpu.matmul %0, %1, %cst {dimension_numbers = #tpu.dot_dimension_numbers<[1], [0], [0], [1], [0, 0, 1, 1], [], []>} : vector<8x768xf32>, vector<768x128xf32>, vector<8x128xf32> -> vector<8x128xf32>
    %c0_3 = arith.constant 0 : index
    %c0_4 = arith.constant 0 : index
    %3 = vector.load %arg3[%c0_3, %c0_4] : memref<1x128xf32, #tpu.memory_space<vmem>>, vector<1x128xf32>
    %4 = vector.broadcast %3 : vector<1x128xf32> to vector<8x128xf32>
    %5 = arith.addf %2, %4 : vector<8x128xf32>
    %cst_5 = arith.constant 0.000000e+00 : f32
    %6 = vector.broadcast %cst_5 : f32 to vector<8x128xf32>
    %7 = arith.maximumf %5, %6 : vector<8x128xf32>
    %8 = arith.mulf %7, %7 : vector<8x128xf32>
    %cst_6 = arith.constant dense<0.000000e+00> : vector<8xf32>
    %9 = vector.multi_reduction <add>, %8, %cst_6 [1] : vector<8x128xf32> to vector<8xf32>
    %10 = vector.shape_cast %9 : vector<8xf32> to vector<8x1xf32>
    %cst_7 = arith.constant 1.000000e-24 : f32
    %11 = vector.broadcast %cst_7 : f32 to vector<8x1xf32>
    %12 = arith.maximumf %10, %11 : vector<8x1xf32>
    %13 = math.rsqrt %12 : vector<8x1xf32>
    %14 = vector.broadcast %13 : vector<8x1xf32> to vector<8x128xf32>
    %15 = arith.mulf %7, %14 : vector<8x128xf32>
    %c0_8 = arith.constant 0 : index
    %c0_9 = arith.constant 0 : index
    %16 = vector.load %arg4[%c0_8, %c0_9] : memref<8x128xf32, #tpu.memory_space<vmem>>, vector<8x128xf32>
    tpu.vector_store %arg4[%c0_8, %c0_9], %15 {strides = array<i32>} : memref<8x128xf32, #tpu.memory_space<vmem>>, vector<8x128xf32>,
    return
  }
  func.func @transform_0(%arg0: i32) -> (i32, i32) {
    %c0_i32 = arith.constant 0 : i32
    %c0_i32_0 = arith.constant 0 : i32
    return %arg0, %c0_i32 : i32, i32
  }
  func.func @transform_1(%arg0: i32) -> (i32, i32) {
    %c0_i32 = arith.constant 0 : i32
    %c0_i32_0 = arith.constant 0 : i32
    %c0_i32_1 = arith.constant 0 : i32
    return %c0_i32, %c0_i32_0 : i32, i32
  }
  func.func @transform_2(%arg0: i32) -> (i32, i32) {
    %c0_i32 = arith.constant 0 : i32
    %c0_i32_0 = arith.constant 0 : i32
    %c0_i32_1 = arith.constant 0 : i32
    return %c0_i32, %c0_i32_0 : i32, i32
  }
  func.func @transform_3(%arg0: i32) -> (i32, i32) {
    %c0_i32 = arith.constant 0 : i32
    %c0_i32_0 = arith.constant 0 : i32
    return %arg0, %c0_i32 : i32, i32
  }
}

</mosaic_0001>

<bundles_post_ra>
// kernel: tpu_custom_call.1
= control target key start
LH: loop header
LB: loop body
LE: loop exit
PB: predicated region body
PF: predicated region fallthrough
CT: control target
= control target key end

     0   :  { %8 = vsyncpa [#allocation3], 0  ;;  %s600_s0 = inlined_call_operand.hbm [shape: f32[8,768], index: 0, kind: input, shape index: {}]   ;;  %s601_s1 = inlined_call_operand.hbm [shape: f32[768,128], index: 1, kind: input, shape index: {}]   ;;  %s602_s2 = inlined_call_operand.vmem [shape: f32[1,128], index: 2, kind: input, shape index: {}]   ;;  %s603_s3 = inlined_call_operand.hbm [shape: f32[8,128], index: 3, kind: output, shape index: {}]  }
   0x1   :  { %9 = vsyncpa [#allocation6], 0 }
   0x2   :  { %10 = vsyncpa [#allocation4], 0  ;;  %s563_s12 = smov [#allocation2]   ;;  %s564_s14 = smov [#allocation5]  }
   0x3   :  { %s17_s13 = sshll.u32 %s563_s12, 4  ;;  %s26_s15 = sshll.u32 %s564_s14, 4  ;;  %s18_s13 = int_to_ptr.vmem [resolvable:$true] %s17_s13  ;;  %s27_s15 = int_to_ptr.vmem [resolvable:$true] %s26_s15 }
   0x4   :  { %s505_s16 = scalar_lea.vmem %s18_s13, 768  ;;  %p510_p1 = scmp.lt.s32.totalorder %s18_s13, %s18_s13 }
   0x5   :  { %p506_p0 = scmp.ne.s32.totalorder %s18_s13, %s505_s16  ;;  %p511_p2 = scmp.lt.s32.totalorder %s505_s16, %s505_s16 }
   0x7   :  { %p512_p3 = por %p511_p2, %p510_p1 }
   0x9   :  { %p513_p4 = pnand %p512_p3, %p506_p0 }
   0xb   :  { %516 = shalt.err (!%p513_p4)
}
   0xc   :  { %20 = dma.hbm_to_vmem [thread:$0]  %s600_s0, 768, %s18_s13, [#allocation3]  }
   0xd   :  { %s525_s19 = scalar_lea.vmem %s27_s15, 12288  ;;  %p530_p6 = scmp.lt.s32.totalorder %s27_s15, %s27_s15 }
   0xe   :  { %p526_p5 = scmp.ne.s32.totalorder %s27_s15, %s525_s19  ;;  %p531_p7 = scmp.lt.s32.totalorder %s525_s19, %s525_s19 }
  0x10   :  { %p532_p8 = por %p531_p7, %p530_p6 }
  0x12   :  { %p533_p9 = pnand %p532_p8, %p526_p5 }
  0x14   :  { %536 = shalt.err (!%p533_p9)
}
  0x15   :  { %s565_s20 = smov 128   ;;  %s566_s21 = smov 8  }
  0x16   :  { %32 = dma.hbm_to_vmem [thread:$0]  %s601_s1, 12288, %s27_s15, [#allocation6], %s565_s20, %s565_s20, %s566_s21  }
  0x17   :  { %557 = dma.done.wait [#allocation3], 768  }
  0x18   :  { %558 = vsyncadd [#allocation3], 4294966528 }
  0x19   :  { %559 = dma.done.wait [#allocation6], 12288  }
  0x1a   :  { %560 = vsyncadd [#allocation6], 4294955008  ;;  %v78_v0 = vld [vmem:[#allocation5 + $0xf8] sm:$0xff]  ;;  %v77_v2 = vld [vmem:[#allocation5 + $0xf0] sm:$0xff]  ;;  %s567_s24 = smov [#allocation7]  }
  0x1b   :  { %v62_v1 = vld [vmem:[#allocation5 + $0x78] sm:$0xff]  ;;  %385 = vmatprep.subr.mxu0 %v78_v0  ;;  %v61_v4 = vld [vmem:[#allocation5 + $0x70] sm:$0xff]  ;;  %v76_v6 = vld [vmem:[#allocation5 + $0xe8] sm:$0xff]  ;;  %s374_s25 = sshll.u32 %s567_s24, 4  ;;  %s375_s25 = int_to_ptr.vmem [resolvable:$true] %s374_s25 }
  0x1c   :  { %v110_v3 = vld [vmem:[#allocation5 + $0x1f8] sm:$0xff]  ;;  %386 = vmatpush3.msra.mxu0 %v62_v1  ;;  %v109_v7 = vld [vmem:[#allocation5 + $0x1f0] sm:$0xff]  ;;  %v60_v8 = vld [vmem:[#allocation5 + $0x68] sm:$0xff]  ;;  %p542_p11 = scmp.lt.s32.totalorder %s375_s25, %s375_s25 }
  0x1d   :  { %v94_v5 = vld [vmem:[#allocation5 + $0x178] sm:$0xff]  ;;  %420 = vmatprep.subr.mxu1 %v110_v3  ;;  %387 = vmatprep.subr.mxu0 %v77_v2  ;;  %v93_v9 = vld [vmem:[#allocation5 + $0x170] sm:$0xff]  ;;  %v108_v10 = vld [vmem:[#allocation5 + $0x1e8] sm:$0xff] }
  0x1e   :  { %421 = vmatpush3.msra.mxu1 %v94_v5  ;;  %388 = vmatpush3.msra.mxu0 %v61_v4  ;;  %v75_v11 = vld [vmem:[#allocation5 + $0xe0] sm:$0xff]  ;;  %v92_v12 = vld [vmem:[#allocation5 + $0x168] sm:$0xff]  ;;  %v74_v15 = vld [vmem:[#allocation5 + $0xd8] sm:$0xff] }
  0x1f   :  { %422 = vmatprep.subr.mxu1 %v109_v7  ;;  %389 = vmatprep.subr.mxu0 %v76_v6  ;;  %v59_v13 = vld [vmem:[#allocation5 + $0x60] sm:$0xff]  ;;  %v58_v17 = vld [vmem:[#allocation5 + $0x58] sm:$0xff]  ;;  %v73_v19 = vld [vmem:[#allocation5 + $0xd0] sm:$0xff] }
  0x20   :  { %423 = vmatpush3.msra.mxu1 %v93_v9  ;;  %v107_v14 = vld [vmem:[#allocation5 + $0x1e0] sm:$0xff]  ;;  %390 = vmatpush3.msra.mxu0 %v60_v8  ;;  %v106_v18 = vld [vmem:[#allocation5 + $0x1d8] sm:$0xff]  ;;  %v57_v21 = vld [vmem:[#allocation5 + $0x50] sm:$0xff] }
  0x21   :  { %424 = vmatprep.subr.mxu1 %v108_v10  ;;  %v91_v16 = vld [vmem:[#allocation5 + $0x160] sm:$0xff]  ;;  %391 = vmatprep.subr.mxu0 %v75_v11  ;;  %v90_v20 = vld [vmem:[#allocation5 + $0x158] sm:$0xff]  ;;  %v105_v22 = vld [vmem:[#allocation5 + $0x1d0] sm:$0xff] }
  0x22   :  { %425 = vmatpush3.msra.mxu1 %v92_v12  ;;  %392 = vmatpush3.msra.mxu0 %v59_v13  ;;  %v72_v23 = vld [vmem:[#allocation5 + $0xc8] sm:$0xff]  ;;  %v89_v24 = vld [vmem:[#allocation5 + $0x150] sm:$0xff]  ;;  %v71_v27 = vld [vmem:[#allocation5 + $0xc0] sm:$0xff] }
  0x23   :  { %426 = vmatprep.subr.mxu1 %v107_v14  ;;  %393 = vmatprep.subr.mxu0 %v74_v15  ;;  %v56_v25 = vld [vmem:[#allocation5 + $0x48] sm:$0xff]  ;;  %v55_v29 = vld [vmem:[#allocation5 + $0x40] sm:$0xff]  ;;  %v70_v31 = vld [vmem:[#allocation5 + $0xb8] sm:$0xff] }
  0x24   :  { %427 = vmatpush3.msra.mxu1 %v91_v16  ;;  %394 = vmatpush3.msra.mxu0 %v58_v17  ;;  %v104_v26 = vld [vmem:[#allocation5 + $0x1c8] sm:$0xff]  ;;  %v103_v30 = vld [vmem:[#allocation5 + $0x1c0] sm:$0xff]  ;;  %v54_v33 = vld [vmem:[#allocation5 + $0x38] sm:$0xff] }
  0x25   :  { %428 = vmatprep.subr.mxu1 %v106_v18  ;;  %395 = vmatprep.subr.mxu0 %v73_v19  ;;  %v88_v28 = vld [vmem:[#allocation5 + $0x148] sm:$0xff]  ;;  %v87_v32 = vld [vmem:[#allocation5 + $0x140] sm:$0xff]  ;;  %v102_v34 = vld [vmem:[#allocation5 + $0x1b8] sm:$0xff] }
  0x26   :  { %429 = vmatpush3.msra.mxu1 %v90_v20  ;;  %396 = vmatpush3.msra.mxu0 %v57_v21  ;;  %v69_v35 = vld [vmem:[#allocation5 + $0xb0] sm:$0xff]  ;;  %v86_v36 = vld [vmem:[#allocation5 + $0x138] sm:$0xff]  ;;  %v68_v39 = vld [vmem:[#allocation5 + $0xa8] sm:$0xff] }
  0x27   :  { %430 = vmatprep.subr.mxu1 %v105_v22  ;;  %397 = vmatprep.subr.mxu0 %v72_v23  ;;  %v53_v37 = vld [vmem:[#allocation5 + $0x30] sm:$0xff]  ;;  %v52_v41 = vld [vmem:[#allocation5 + $0x28] sm:$0xff]  ;;  %v67_v43 = vld [vmem:[#allocation5 + $0xa0] sm:$0xff] }
  0x28   :  { %431 = vmatpush3.msra.mxu1 %v89_v24  ;;  %398 = vmatpush3.msra.mxu0 %v56_v25  ;;  %v101_v38 = vld [vmem:[#allocation5 + $0x1b0] sm:$0xff]  ;;  %v100_v42 = vld [vmem:[#allocation5 + $0x1a8] sm:$0xff]  ;;  %v51_v45 = vld [vmem:[#allocation5 + $0x20] sm:$0xff] }
  0x29   :  { %432 = vmatprep.subr.mxu1 %v104_v26  ;;  %399 = vmatprep.subr.mxu0 %v71_v27  ;;  %v85_v40 = vld [vmem:[#allocation5 + $0x130] sm:$0xff]  ;;  %v84_v44 = vld [vmem:[#allocation5 + $0x128] sm:$0xff]  ;;  %v99_v46 = vld [vmem:[#allocation5 + $0x1a0] sm:$0xff] }
  0x2a   :  { %433 = vmatpush3.msra.mxu1 %v88_v28  ;;  %400 = vmatpush3.msra.mxu0 %v55_v29  ;;  %v66_v47 = vld [vmem:[#allocation5 + $0x98] sm:$0xff]  ;;  %v83_v48 = vld [vmem:[#allocation5 + $0x120] sm:$0xff]  ;;  %v65_v51 = vld [vmem:[#allocation5 + $0x90] sm:$0xff] }
  0x2b   :  { %434 = vmatprep.subr.mxu1 %v103_v30  ;;  %401 = vmatprep.subr.mxu0 %v70_v31  ;;  %v50_v49 = vld [vmem:[#allocation5 + $0x18] sm:$0xff]  ;;  %v49_v53 = vld [vmem:[#allocation5 + $0x10] sm:$0xff]  ;;  %v64_v55 = vld [vmem:[#allocation5 + $0x88] sm:$0xff] }
  0x2c   :  { %435 = vmatpush3.msra.mxu1 %v87_v32  ;;  %402 = vmatpush3.msra.mxu0 %v54_v33  ;;  %v98_v50 = vld [vmem:[#allocation5 + $0x198] sm:$0xff]  ;;  %v97_v54 = vld [vmem:[#allocation5 + $0x190] sm:$0xff]  ;;  %v48_v57 = vld [vmem:[#allocation5 + $0x8] sm:$0xff] }
  0x2d   :  { %436 = vmatprep.subr.mxu1 %v102_v34  ;;  %403 = vmatprep.subr.mxu0 %v69_v35  ;;  %v82_v52 = vld [vmem:[#allocation5 + $0x118] sm:$0xff]  ;;  %v81_v56 = vld [vmem:[#allocation5 + $0x110] sm:$0xff]  ;;  %v96_v58 = vld [vmem:[#allocation5 + $0x188] sm:$0xff] }
  0x2e   :  { %437 = vmatpush3.msra.mxu1 %v86_v36  ;;  %404 = vmatpush3.msra.mxu0 %v53_v37  ;;  %v63_v59 = vld [vmem:[#allocation5 + $0x80] sm:$0xff]  ;;  %v42_v60 = vld [vmem:[#allocation2 + $0x8] sm:$0xff]  ;;  %v80_v62 = vld [vmem:[#allocation5 + $0x108] sm:$0xff] }
  0x2f   :  { %438 = vmatprep.subr.mxu1 %v101_v38  ;;  %405 = vmatprep.subr.mxu0 %v68_v39  ;;  %v47_v61 = vld [vmem:[#allocation5] sm:$0xff]  ;;  %v41_v63 = vld [vmem:[#allocation2] sm:$0xff]  ;;  %v142_v1 = vld [vmem:[#allocation5 + $0x2f8] sm:$0xff] }
  0x30   :  { %439 = vmatpush3.msra.mxu1 %v85_v40  ;;  %406 = vmatpush3.msra.mxu0 %v52_v41  ;;  %v95_v0 = vld [vmem:[#allocation5 + $0x180] sm:$0xff]  ;;  %v44_v3 = vld [vmem:[#allocation2 + $0x18] sm:$0xff]  ;;  %v126_v4 = vld [vmem:[#allocation5 + $0x278] sm:$0xff] }
  0x31   :  { %440 = vmatprep.subr.mxu1 %v100_v42  ;;  %407 = vmatprep.subr.mxu0 %v67_v43  ;;  %v79_v2 = vld [vmem:[#allocation5 + $0x100] sm:$0xff]  ;;  %v141_v6 = vld [vmem:[#allocation5 + $0x2f0] sm:$0xff]  ;;  %v46_v8 = vld [vmem:[#allocation2 + $0x28] sm:$0xff] }
  0x32   :  { %441 = vmatpush3.msra.mxu1 %v84_v44  ;;  %408 = vmatpush3.msra.mxu0 %v51_v45  ;;  %v43_v5 = vld [vmem:[#allocation2 + $0x10] sm:$0xff]  ;;  %v125_v7 = vld [vmem:[#allocation5 + $0x270] sm:$0xff]  ;;  %v140_v9 = vld [vmem:[#allocation5 + $0x2e8] sm:$0xff] }
  0x33   :  { %442 = vmatprep.subr.mxu1 %v99_v46  ;;  %409 = vmatprep.subr.mxu0 %v66_v47  ;;  %v124_v10 = vld [vmem:[#allocation5 + $0x268] sm:$0xff]  ;;  %v139_v11 = vld [vmem:[#allocation5 + $0x2e0] sm:$0xff]  ;;  %v138_v13 = vld [vmem:[#allocation5 + $0x2d8] sm:$0xff] }
  0x34   :  { %443 = vmatpush3.msra.mxu1 %v83_v48  ;;  %410 = vmatpush3.msra.mxu0 %v50_v49  ;;  %v123_v12 = vld [vmem:[#allocation5 + $0x260] sm:$0xff]  ;;  %v122_v14 = vld [vmem:[#allocation5 + $0x258] sm:$0xff]  ;;  %v137_v15 = vld [vmem:[#allocation5 + $0x2d0] sm:$0xff] }
  0x35   :  { %444 = vmatprep.subr.mxu1 %v98_v50  ;;  %411 = vmatprep.subr.mxu0 %v65_v51  ;;  %v121_v16 = vld [vmem:[#allocation5 + $0x250] sm:$0xff]  ;;  %v136_v17 = vld [vmem:[#allocation5 + $0x2c8] sm:$0xff]  ;;  %v135_v19 = vld [vmem:[#allocation5 + $0x2c0] sm:$0xff] }
  0x36   :  { %445 = vmatpush3.msra.mxu1 %v82_v52  ;;  %412 = vmatpush3.msra.mxu0 %v49_v53  ;;  %v120_v18 = vld [vmem:[#allocation5 + $0x248] sm:$0xff]  ;;  %v119_v20 = vld [vmem:[#allocation5 + $0x240] sm:$0xff]  ;;  %v134_v21 = vld [vmem:[#allocation5 + $0x2b8] sm:$0xff] }
  0x37   :  { %446 = vmatprep.subr.mxu1 %v97_v54  ;;  %413 = vmatprep.subr.mxu0 %v64_v55  ;;  %v118_v22 = vld [vmem:[#allocation5 + $0x238] sm:$0xff]  ;;  %v133_v23 = vld [vmem:[#allocation5 + $0x2b0] sm:$0xff]  ;;  %v132_v25 = vld [vmem:[#allocation5 + $0x2a8] sm:$0xff] }
  0x38   :  { %447 = vmatpush3.msra.mxu1 %v81_v56  ;;  %414 = vmatpush3.msra.mxu0 %v48_v57  ;;  %v117_v24 = vld [vmem:[#allocation5 + $0x230] sm:$0xff]  ;;  %v116_v26 = vld [vmem:[#allocation5 + $0x228] sm:$0xff]  ;;  %v131_v27 = vld [vmem:[#allocation5 + $0x2a0] sm:$0xff] }
  0x39   :  { %448 = vmatprep.subr.mxu1 %v96_v58  ;;  %415 = vmatprep.subr.mxu0 %v63_v59  ;;  %v115_v28 = vld [vmem:[#allocation5 + $0x220] sm:$0xff]  ;;  %v130_v29 = vld [vmem:[#allocation5 + $0x298] sm:$0xff]  ;;  %v129_v31 = vld [vmem:[#allocation5 + $0x290] sm:$0xff] }
  0x3a   :  { %214 = vmatprep.mubr.f32.mxu0 %v42_v60  ;;  %416 = vmatpush3.msra.mxu0 %v47_v61  ;;  %v114_v30 = vld [vmem:[#allocation5 + $0x218] sm:$0xff]  ;;  %v113_v32 = vld [vmem:[#allocation5 + $0x210] sm:$0xff]  ;;  %v128_v33 = vld [vmem:[#allocation5 + $0x288] sm:$0xff] }
  0x3b   :  { %449 = vmatpush3.msra.mxu1 %v80_v62  ;;  %215 = vmatmul.mubr.f32.vlgmr.msra.gmra.mxu0 %v41_v63  ;;  %v112_v34 = vld [vmem:[#allocation5 + $0x208] sm:$0xff]  ;;  %v127_v35 = vld [vmem:[#allocation5 + $0x280] sm:$0xff]  ;;  %v45_v37 = vld [vmem:[#allocation2 + $0x20] sm:$0xff] }
  0x3c   :  { %450 = vmatprep.subr.mxu1 %v95_v0  ;;  %455 = vmatprep.subr.mxu0 %v142_v1  ;;  %v111_v36 = vld [vmem:[#allocation5 + $0x200] sm:$0xff]  ;;  %v384_v42 = vld [vmem:[%s602_s2] ss:$0 sm:$0xff]  ;;  %s537_s2 = scalar_lea.vmem %s375_s25, 128 }
  0x3d   :  { %451 = vmatpush3.msra.mxu1 %v79_v2  ;;  %284 = vmatprep.mubr.f32.mxu1 %v44_v3  ;;  %p538_p10 = scmp.ne.s32.totalorder %s375_s25, %s537_s2  ;;  %p543_p12 = scmp.lt.s32.totalorder %s537_s2, %s537_s2 }
  0x3e   :  { %456 = vmatpush3.msra.mxu0 %v126_v4  ;;  %285 = vmatmul.mubr.f32.vlgmr.msra.gmra.mxu1 %v43_v5 }
  0x3f   :  { %457 = vmatprep.subr.mxu0 %v141_v6  ;;  %354 = vmatprep.mubr.f32.mxu0 %v46_v8  ;;  %p544_p13 = por %p543_p12, %p542_p11 }
  0x40   :  { %458 = vmatpush3.msra.mxu0 %v125_v7 }
  0x41   :  { %459 = vmatprep.subr.mxu0 %v140_v9  ;;  %p545_p0 = pnand %p544_p13, %p538_p10 }
  0x42   :  { %460 = vmatpush3.msra.mxu0 %v124_v10 }
  0x43   :  { %461 = vmatprep.subr.mxu0 %v139_v11 }
  0x44   :  { %462 = vmatpush3.msra.mxu0 %v123_v12 }
  0x45   :  { %463 = vmatprep.subr.mxu0 %v138_v13 }
  0x46   :  { %464 = vmatpush3.msra.mxu0 %v122_v14 }
  0x47   :  { %465 = vmatprep.subr.mxu0 %v137_v15 }
  0x48   :  { %466 = vmatpush3.msra.mxu0 %v121_v16 }
  0x49   :  { %467 = vmatprep.subr.mxu0 %v136_v17 }
  0x4a   :  { %468 = vmatpush3.msra.mxu0 %v120_v18 }
  0x4b   :  { %469 = vmatprep.subr.mxu0 %v135_v19 }
  0x4c   :  { %470 = vmatpush3.msra.mxu0 %v119_v20 }
  0x4d   :  { %471 = vmatprep.subr.mxu0 %v134_v21 }
  0x4e   :  { %472 = vmatpush3.msra.mxu0 %v118_v22 }
  0x4f   :  { %473 = vmatprep.subr.mxu0 %v133_v23 }
  0x50   :  { %474 = vmatpush3.msra.mxu0 %v117_v24 }
  0x51   :  { %475 = vmatprep.subr.mxu0 %v132_v25 }
  0x52   :  { %476 = vmatpush3.msra.mxu0 %v116_v26 }
  0x53   :  { %477 = vmatprep.subr.mxu0 %v131_v27 }
  0x54   :  { %478 = vmatpush3.msra.mxu0 %v115_v28 }
  0x55   :  { %479 = vmatprep.subr.mxu0 %v130_v29 }
  0x56   :  { %480 = vmatpush3.msra.mxu0 %v114_v30 }
  0x57   :  { %481 = vmatprep.subr.mxu0 %v129_v31 }
  0x58   :  { %482 = vmatpush3.msra.mxu0 %v113_v32 }
  0x59   :  { %483 = vmatprep.subr.mxu0 %v128_v33 }
  0x5a   :  { %484 = vmatpush3.msra.mxu0 %v112_v34 }
  0x5b   :  { %485 = vmatprep.subr.mxu0 %v127_v35 }
  0x5c   :  { %486 = vmatpush3.msra.mxu0 %v111_v36 }
  0x5d   :  { %355 = vmatmul.mubr.f32.vlgmr.msra.gmra.mxu0 %v45_v37 }
  0xfb   :  { %v417_v38 = vpop.f32.mrf.mxu0 }
  0xfd   :  { %v418_v39 = vpop.f32.mrf.mxu0 }
  0xfe   :  { %v452_v40 = vpop.f32.mrf.mxu1  ;;  %v419_v41 = vadd.f32 %v418_v39, %v417_v38 }
 0x100   :  { %v453_v43 = vpop.f32.mrf.mxu1  ;;  %v217_v44 = vadd.f32 %v419_v41, %v384_v42 }
 0x101   :  { %v454_v45 = vadd.f32 %v453_v43, %v452_v40 }
 0x103   :  { %v287_v48 = vadd.f32 %v454_v45, %v217_v44 }
 0x11d   :  { %v487_v46 = vpop.f32.mrf.mxu0 }
 0x11f   :  { %v488_v47 = vpop.f32.mrf.mxu0 }
 0x120   :  { %v489_v49 = vadd.f32 %v488_v47, %v487_v46 }
 0x122   :  { %v357_v50 = vadd.f32 %v489_v49, %v287_v48 }
 0x124   :  { %v360_v51 = vmax.f32 %v357_v50, 0.0 }
 0x126   :  { %v361_v52 = vmul.f32 %v360_v51, %v360_v51 }
 0x128   :  { %362 = vadd.xlane.f32.xlu0 %v361_v52 }
 0x1b1   :  { %v363_v53 = vpop.xlane.xlu0 %362 }
 0x1b2   :  { %v364_v54 = vmax.f32 %v363_v53, 1e-24 }
 0x1b4   :  { %495 = vrsqrt.f32 %v364_v54 }
 0x1c1   :  { %v496_v55 = vpop.eup %495 }
 0x1c2   :  { %v366_v56 = vmul.f32 %v496_v55, %v360_v51 }
 0x1c4   :  { %367 = vst [vmem:[#allocation7] sm:$0xff] %v366_v56 }
 0x1c5   :  { %548 = shalt.err (!%p545_p0)
}
 0x1c6   :  { %377 = dma.vmem_to_hbm [thread:$0]  %s375_s25, 128, %s603_s3, [#allocation4]  }
 0x1c7   :  { %561 = dma.done.wait [#allocation4], 128  }
 0x1c8   :  { %562 = vsyncadd [#allocation4], 4294967168 }
 0x1c9   :  { %381 = vsyncpa [#allocation3], 1 }
 0x1ca   :  { %382 = vsyncpa [#allocation6], 1 }
 0x1cb   :  { %383 = vsyncpa [#allocation4], 1 }

</bundles_post_ra>
